<compile_context>
chip_gen: v5e
topology: v5e:2x2
jax: 0.10.0
libtpu: 0.0.40
codegen_flags: <defaults>
</compile_context>

<pallas_src>
import jax
import jax.numpy as jnp
from jax.experimental import pallas as pl
from jax.experimental.pallas import tpu as pltpu

# ---- problem sizes (SampleNet: Conv2d(3, 10, kernel_size=5), valid padding) ----
C_IN = 3
C_OUT = 10
KH = KW = 5
CPAD = 8                      # input channels zero-padded to one sublane tile
KPACK = KH * KW * CPAD        # 200: contraction length of the single matmul


def _pick_batch_tile(n):
    """Largest batch tile in {8,4,2,1} that still leaves >= 2 grid steps
    (amortizes per-step overhead while keeping both TensorCores busy)."""
    for d in (8, 4, 2, 1):
        if n % d == 0 and n // d >= 2:
            return d
    return n  # n == 1


def _make_conv_relu(H, W, B):
    HW = H * W
    taps = [(kh, kw) for kh in range(KH) for kw in range(KW)]

    def kernel(x_ref, w_ref, b_ref, o_ref, cols_ref):
        # x_ref:    (B, C_IN, HW)    flattened NCHW input block
        # w_ref:    (C_OUT, KPACK)   packed weight (zero rows for pad channels)
        # b_ref:    (C_OUT, 1)
        # o_ref:    (B, C_OUT, HW)   flattened NCHW output (full width; the
        #                            garbage columns are trimmed by the wrapper)
        # cols_ref: (KPACK, HW)      VMEM im2col scratch
        w = w_ref[...]                       # (C_OUT, KPACK)
        bias = b_ref[...]                    # (C_OUT, 1) broadcasts over lanes
        # Zero the scratch once per grid step: the 5 padded rows of every
        # 8-row tap group must stay exactly 0 (their packed weights are 0 too).
        cols_ref[...] = jnp.zeros_like(cols_ref)

        for b in range(B):                   # static unroll over the batch tile
            xb = x_ref[b]                    # (C_IN, HW)
            # Doubled row buffer: aligned lane concat; a static slice at lane
            # offset t then gives window[p] = xb[(p + t) % HW] (a lane shift).
            xx = jnp.concatenate([xb, xb], axis=1)        # (C_IN, 2*HW)
            for i, (kh, kw) in enumerate(taps):
                t = kh * W + kw              # flattened spatial tap offset
                # Aligned 8-row group i, rows 0..C_IN-1 hold the shifted image.
                cols_ref[i * CPAD:i * CPAD + C_IN, :] = xx[:, t:t + HW]
            cols = cols_ref[...]             # (KPACK, HW)
            # Single MXU contraction for all 25 taps * 3 channels, then bias.
            acc = jnp.dot(w, cols, preferred_element_type=jnp.float32) + bias
            o_ref[b] = jnp.maximum(acc, 0.0).astype(o_ref.dtype)   # ReLU

    def conv_relu(x_flat, w_packed, bias2d):
        N = x_flat.shape[0]
        return pl.pallas_call(
            kernel,
            out_shape=jax.ShapeDtypeStruct((N, C_OUT, HW), x_flat.dtype),
            grid_spec=pltpu.PrefetchScalarGridSpec(
                num_scalar_prefetch=0,
                grid=(N // B,),
                in_specs=[
                    pl.BlockSpec((B, C_IN, HW), lambda n: (n, 0, 0)),
                    pl.BlockSpec((C_OUT, KPACK), lambda n: (0, 0)),
                    pl.BlockSpec((C_OUT, 1), lambda n: (0, 0)),
                ],
                out_specs=pl.BlockSpec((B, C_OUT, HW), lambda n: (n, 0, 0)),
                scratch_shapes=[pltpu.VMEM((KPACK, HW), jnp.float32)],
            ),
            compiler_params=pltpu.CompilerParams(
                dimension_semantics=("parallel",),
                vmem_limit_bytes=32 * 1024 * 1024,   # safe on v5e/v6e/v7x
            ),
        )(x_flat, w_packed, bias2d)

    return conv_relu


def sample_net_forward(x_nchw, weight_oihw, bias):
    """Forward pass of SampleNet: relu(conv2d(x, W, b)) with valid padding.

    Args:
      x_nchw:      (N, 3, H, W)  float32   (PyTorch NCHW convention)
      weight_oihw: (10, 3, 5, 5) float32   (PyTorch OIHW convention)
      bias:        (10,)         float32
    Returns:
      (N, 10, H-4, W-4) float32 in NCHW, matching PyTorch output.
    """
    N, C, H, W = x_nchw.shape
    assert C == C_IN and H >= KH and W >= KW
    OH, OW = H - KH + 1, W - KW + 1
    HW = H * W

    # Free, contiguous reshape: spatial goes onto the lane axis. No transposes.
    x_flat = x_nchw.reshape(N, C_IN, HW)

    # Pack the (tiny) weight once: (C_OUT, KH*KW, CPAD) with input channels
    # zero-padded 3 -> 8 so each tap group matches one aligned 8-sublane block
    # of the kernel's im2col scratch; flatten to the (C_OUT, KPACK) operand.
    w_taps = jnp.transpose(weight_oihw, (0, 2, 3, 1)).reshape(C_OUT, KH * KW, C_IN)
    w_packed = jnp.zeros((C_OUT, KH * KW, CPAD), weight_oihw.dtype)
    w_packed = w_packed.at[:, :, :C_IN].set(w_taps).reshape(C_OUT, KPACK)

    b2d = bias.reshape(C_OUT, 1).astype(jnp.float32)

    B = _pick_batch_tile(N)
    out_flat = _make_conv_relu(H, W, B)(x_flat, w_packed, b2d)   # (N, C_OUT, HW)

    # Free reshape back to full-width spatial, then trim to the valid window.
    return out_flat.reshape(N, C_OUT, H, W)[:, :, :OH, :OW]


if __name__ == "__main__":
    key = jax.random.PRNGKey(0)
    k_x, k_w, k_b = jax.random.split(key, 3)

    # small shapes consistent with the module: batch=2, 3 channels, 16x16 spatial
    N, H, W = 2, 16, 16
    x = jax.random.normal(k_x, (N, C_IN, H, W), dtype=jnp.float32)

    # Deterministic parameter init (PyTorch-style uniform bound = 1/sqrt(fan_in)).
    fan_in = C_IN * KH * KW
    bound = 1.0 / (fan_in ** 0.5)
    weight = jax.random.uniform(k_w, (C_OUT, C_IN, KH, KW),
                                minval=-bound, maxval=bound, dtype=jnp.float32)
    bias = jax.random.uniform(k_b, (C_OUT,),
                              minval=-bound, maxval=bound, dtype=jnp.float32)

    out = jax.block_until_ready(sample_net_forward(x, weight, bias))

    # sanity check against XLA's reference conv (same semantics as F.conv2d)
    ref = jax.lax.conv_general_dilated(
        x, weight, window_strides=(1, 1), padding="VALID",
        dimension_numbers=("NCHW", "OIHW", "NCHW"))
    ref = jnp.maximum(ref + bias[None, :, None, None], 0.0)
    assert out.shape == (N, C_OUT, H - KH + 1, W - KW + 1)
    assert jnp.allclose(out, ref, atol=1e-4, rtol=1e-4), \
        float(jnp.max(jnp.abs(out - ref)))

    print("KERNEL_OK")
</pallas_src>

<mosaic_0001>
module attributes {stable_mosaic.version = 11 : i64} {
  func.func @kernel(%arg0: i32, %arg1: memref<1x3x256xf32, #tpu.memory_space<vmem>>, %arg2: memref<10x200xf32, #tpu.memory_space<vmem>>, %arg3: memref<10x1xf32, #tpu.memory_space<vmem>>, %arg4: memref<1x10x256xf32, #tpu.memory_space<vmem>>, %arg5: memref<200x256xf32, #tpu.memory_space<vmem>>) attributes {dimension_semantics = [#tpu.dimension_semantics<parallel>], iteration_bounds = array<i64: 2>, scalar_prefetch = 0 : i64, scratch_operands = 1 : i64, tpu.core_type = #tpu.core_type<tc>, window_params = [{transform_indices = @transform_0, window_bounds = array<i64: 1, 3, 256>}, {pipeline_mode = #tpu.pipeline_mode<synchronous>, transform_indices = @transform_1, window_bounds = array<i64: 10, 200>}, {pipeline_mode = #tpu.pipeline_mode<synchronous>, transform_indices = @transform_2, window_bounds = array<i64: 10, 1>}, {transform_indices = @transform_3, window_bounds = array<i64: 1, 10, 256>}]} {
    %c0 = arith.constant 0 : index
    %c0_0 = arith.constant 0 : index
    %0 = vector.load %arg2[%c0, %c0_0] : memref<10x200xf32, #tpu.memory_space<vmem>>, vector<10x200xf32>
    %c0_1 = arith.constant 0 : index
    %c0_2 = arith.constant 0 : index
    %1 = vector.load %arg3[%c0_1, %c0_2] : memref<10x1xf32, #tpu.memory_space<vmem>>, vector<10x1xf32>
    %cst = arith.constant 0.000000e+00 : f32
    %2 = vector.broadcast %cst : f32 to vector<200x256xf32>
    %c0_3 = arith.constant 0 : index
    %c0_4 = arith.constant 0 : index
    %3 = vector.load %arg5[%c0_3, %c0_4] : memref<200x256xf32, #tpu.memory_space<vmem>>, vector<200x256xf32>
    tpu.vector_store %arg5[%c0_3, %c0_4], %2 {strides = array<i32>} : memref<200x256xf32, #tpu.memory_space<vmem>>, vector<200x256xf32>,
    %c0_5 = arith.constant 0 : index
    %c0_6 = arith.constant 0 : index
    %c0_7 = arith.constant 0 : index
    %4 = vector.load %arg1[%c0_5, %c0_6, %c0_7] : memref<1x3x256xf32, #tpu.memory_space<vmem>>, vector<1x3x256xf32>
    %5 = vector.shape_cast %4 : vector<1x3x256xf32> to vector<3x256xf32>
    %6 = tpu.concatenate %5, %5 in 1 : vector<3x256xf32>, vector<3x256xf32> -> vector<3x512xf32>
    %7 = vector.extract_strided_slice %6 {offsets = [0, 0], sizes = [3, 256], strides = [1, 1]} : vector<3x512xf32> to vector<3x256xf32>
    %c0_8 = arith.constant 0 : index
    %c0_9 = arith.constant 0 : index
    %8 = vector.load %arg5[%c0_8, %c0_9] : memref<200x256xf32, #tpu.memory_space<vmem>>, vector<3x256xf32>
    tpu.vector_store %arg5[%c0_8, %c0_9], %7 {strides = array<i32>} : memref<200x256xf32, #tpu.memory_space<vmem>>, vector<3x256xf32>,
    %9 = vector.extract_strided_slice %6 {offsets = [0, 1], sizes = [3, 256], strides = [1, 1]} : vector<3x512xf32> to vector<3x256xf32>
    %c8 = arith.constant 8 : index
    %c0_10 = arith.constant 0 : index
    %10 = vector.load %arg5[%c8, %c0_10] : memref<200x256xf32, #tpu.memory_space<vmem>>, vector<3x256xf32>
    tpu.vector_store %arg5[%c8, %c0_10], %9 {strides = array<i32>} : memref<200x256xf32, #tpu.memory_space<vmem>>, vector<3x256xf32>,
    %11 = vector.extract_strided_slice %6 {offsets = [0, 2], sizes = [3, 256], strides = [1, 1]} : vector<3x512xf32> to vector<3x256xf32>
    %c16 = arith.constant 16 : index
    %c0_11 = arith.constant 0 : index
    %12 = vector.load %arg5[%c16, %c0_11] : memref<200x256xf32, #tpu.memory_space<vmem>>, vector<3x256xf32>
    tpu.vector_store %arg5[%c16, %c0_11], %11 {strides = array<i32>} : memref<200x256xf32, #tpu.memory_space<vmem>>, vector<3x256xf32>,
    %13 = vector.extract_strided_slice %6 {offsets = [0, 3], sizes = [3, 256], strides = [1, 1]} : vector<3x512xf32> to vector<3x256xf32>
    %c24 = arith.constant 24 : index
    %c0_12 = arith.constant 0 : index
    %14 = vector.load %arg5[%c24, %c0_12] : memref<200x256xf32, #tpu.memory_space<vmem>>, vector<3x256xf32>
    tpu.vector_store %arg5[%c24, %c0_12], %13 {strides = array<i32>} : memref<200x256xf32, #tpu.memory_space<vmem>>, vector<3x256xf32>,
    %15 = vector.extract_strided_slice %6 {offsets = [0, 4], sizes = [3, 256], strides = [1, 1]} : vector<3x512xf32> to vector<3x256xf32>
    %c32 = arith.constant 32 : index
    %c0_13 = arith.constant 0 : index
    %16 = vector.load %arg5[%c32, %c0_13] : memref<200x256xf32, #tpu.memory_space<vmem>>, vector<3x256xf32>
    tpu.vector_store %arg5[%c32, %c0_13], %15 {strides = array<i32>} : memref<200x256xf32, #tpu.memory_space<vmem>>, vector<3x256xf32>,
    %17 = vector.extract_strided_slice %6 {offsets = [0, 16], sizes = [3, 256], strides = [1, 1]} : vector<3x512xf32> to vector<3x256xf32>
    %c40 = arith.constant 40 : index
    %c0_14 = arith.constant 0 : index
    %18 = vector.load %arg5[%c40, %c0_14] : memref<200x256xf32, #tpu.memory_space<vmem>>, vector<3x256xf32>
    tpu.vector_store %arg5[%c40, %c0_14], %17 {strides = array<i32>} : memref<200x256xf32, #tpu.memory_space<vmem>>, vector<3x256xf32>,
    %19 = vector.extract_strided_slice %6 {offsets = [0, 17], sizes = [3, 256], strides = [1, 1]} : vector<3x512xf32> to vector<3x256xf32>
    %c48 = arith.constant 48 : index
    %c0_15 = arith.constant 0 : index
    %20 = vector.load %arg5[%c48, %c0_15] : memref<200x256xf32, #tpu.memory_space<vmem>>, vector<3x256xf32>
    tpu.vector_store %arg5[%c48, %c0_15], %19 {strides = array<i32>} : memref<200x256xf32, #tpu.memory_space<vmem>>, vector<3x256xf32>,
    %21 = vector.extract_strided_slice %6 {offsets = [0, 18], sizes = [3, 256], strides = [1, 1]} : vector<3x512xf32> to vector<3x256xf32>
    %c56 = arith.constant 56 : index
    %c0_16 = arith.constant 0 : index
    %22 = vector.load %arg5[%c56, %c0_16] : memref<200x256xf32, #tpu.memory_space<vmem>>, vector<3x256xf32>
    tpu.vector_store %arg5[%c56, %c0_16], %21 {strides = array<i32>} : memref<200x256xf32, #tpu.memory_space<vmem>>, vector<3x256xf32>,
    %23 = vector.extract_strided_slice %6 {offsets = [0, 19], sizes = [3, 256], strides = [1, 1]} : vector<3x512xf32> to vector<3x256xf32>
    %c64 = arith.constant 64 : index
    %c0_17 = arith.constant 0 : index
    %24 = vector.load %arg5[%c64, %c0_17] : memref<200x256xf32, #tpu.memory_space<vmem>>, vector<3x256xf32>
    tpu.vector_store %arg5[%c64, %c0_17], %23 {strides = array<i32>} : memref<200x256xf32, #tpu.memory_space<vmem>>, vector<3x256xf32>,
    %25 = vector.extract_strided_slice %6 {offsets = [0, 20], sizes = [3, 256], strides = [1, 1]} : vector<3x512xf32> to vector<3x256xf32>
    %c72 = arith.constant 72 : index
    %c0_18 = arith.constant 0 : index
    %26 = vector.load %arg5[%c72, %c0_18] : memref<200x256xf32, #tpu.memory_space<vmem>>, vector<3x256xf32>
    tpu.vector_store %arg5[%c72, %c0_18], %25 {strides = array<i32>} : memref<200x256xf32, #tpu.memory_space<vmem>>, vector<3x256xf32>,
    %27 = vector.extract_strided_slice %6 {offsets = [0, 32], sizes = [3, 256], strides = [1, 1]} : vector<3x512xf32> to vector<3x256xf32>
    %c80 = arith.constant 80 : index
    %c0_19 = arith.constant 0 : index
    %28 = vector.load %arg5[%c80, %c0_19] : memref<200x256xf32, #tpu.memory_space<vmem>>, vector<3x256xf32>
    tpu.vector_store %arg5[%c80, %c0_19], %27 {strides = array<i32>} : memref<200x256xf32, #tpu.memory_space<vmem>>, vector<3x256xf32>,
    %29 = vector.extract_strided_slice %6 {offsets = [0, 33], sizes = [3, 256], strides = [1, 1]} : vector<3x512xf32> to vector<3x256xf32>
    %c88 = arith.constant 88 : index
    %c0_20 = arith.constant 0 : index
    %30 = vector.load %arg5[%c88, %c0_20] : memref<200x256xf32, #tpu.memory_space<vmem>>, vector<3x256xf32>
    tpu.vector_store %arg5[%c88, %c0_20], %29 {strides = array<i32>} : memref<200x256xf32, #tpu.memory_space<vmem>>, vector<3x256xf32>,
    %31 = vector.extract_strided_slice %6 {offsets = [0, 34], sizes = [3, 256], strides = [1, 1]} : vector<3x512xf32> to vector<3x256xf32>
    %c96 = arith.constant 96 : index
    %c0_21 = arith.constant 0 : index
    %32 = vector.load %arg5[%c96, %c0_21] : memref<200x256xf32, #tpu.memory_space<vmem>>, vector<3x256xf32>
    tpu.vector_store %arg5[%c96, %c0_21], %31 {strides = array<i32>} : memref<200x256xf32, #tpu.memory_space<vmem>>, vector<3x256xf32>,
    %33 = vector.extract_strided_slice %6 {offsets = [0, 35], sizes = [3, 256], strides = [1, 1]} : vector<3x512xf32> to vector<3x256xf32>
    %c104 = arith.constant 104 : index
    %c0_22 = arith.constant 0 : index
    %34 = vector.load %arg5[%c104, %c0_22] : memref<200x256xf32, #tpu.memory_space<vmem>>, vector<3x256xf32>
    tpu.vector_store %arg5[%c104, %c0_22], %33 {strides = array<i32>} : memref<200x256xf32, #tpu.memory_space<vmem>>, vector<3x256xf32>,
    %35 = vector.extract_strided_slice %6 {offsets = [0, 36], sizes = [3, 256], strides = [1, 1]} : vector<3x512xf32> to vector<3x256xf32>
    %c112 = arith.constant 112 : index
    %c0_23 = arith.constant 0 : index
    %36 = vector.load %arg5[%c112, %c0_23] : memref<200x256xf32, #tpu.memory_space<vmem>>, vector<3x256xf32>
    tpu.vector_store %arg5[%c112, %c0_23], %35 {strides = array<i32>} : memref<200x256xf32, #tpu.memory_space<vmem>>, vector<3x256xf32>,
    %37 = vector.extract_strided_slice %6 {offsets = [0, 48], sizes = [3, 256], strides = [1, 1]} : vector<3x512xf32> to vector<3x256xf32>
    %c120 = arith.constant 120 : index
    %c0_24 = arith.constant 0 : index
    %38 = vector.load %arg5[%c120, %c0_24] : memref<200x256xf32, #tpu.memory_space<vmem>>, vector<3x256xf32>
    tpu.vector_store %arg5[%c120, %c0_24], %37 {strides = array<i32>} : memref<200x256xf32, #tpu.memory_space<vmem>>, vector<3x256xf32>,
    %39 = vector.extract_strided_slice %6 {offsets = [0, 49], sizes = [3, 256], strides = [1, 1]} : vector<3x512xf32> to vector<3x256xf32>
    %c128 = arith.constant 128 : index
    %c0_25 = arith.constant 0 : index
    %40 = vector.load %arg5[%c128, %c0_25] : memref<200x256xf32, #tpu.memory_space<vmem>>, vector<3x256xf32>
    tpu.vector_store %arg5[%c128, %c0_25], %39 {strides = array<i32>} : memref<200x256xf32, #tpu.memory_space<vmem>>, vector<3x256xf32>,
    %41 = vector.extract_strided_slice %6 {offsets = [0, 50], sizes = [3, 256], strides = [1, 1]} : vector<3x512xf32> to vector<3x256xf32>
    %c136 = arith.constant 136 : index
    %c0_26 = arith.constant 0 : index
    %42 = vector.load %arg5[%c136, %c0_26] : memref<200x256xf32, #tpu.memory_space<vmem>>, vector<3x256xf32>
    tpu.vector_store %arg5[%c136, %c0_26], %41 {strides = array<i32>} : memref<200x256xf32, #tpu.memory_space<vmem>>, vector<3x256xf32>,
    %43 = vector.extract_strided_slice %6 {offsets = [0, 51], sizes = [3, 256], strides = [1, 1]} : vector<3x512xf32> to vector<3x256xf32>
    %c144 = arith.constant 144 : index
    %c0_27 = arith.constant 0 : index
    %44 = vector.load %arg5[%c144, %c0_27] : memref<200x256xf32, #tpu.memory_space<vmem>>, vector<3x256xf32>
    tpu.vector_store %arg5[%c144, %c0_27], %43 {strides = array<i32>} : memref<200x256xf32, #tpu.memory_space<vmem>>, vector<3x256xf32>,
    %45 = vector.extract_strided_slice %6 {offsets = [0, 52], sizes = [3, 256], strides = [1, 1]} : vector<3x512xf32> to vector<3x256xf32>
    %c152 = arith.constant 152 : index
    %c0_28 = arith.constant 0 : index
    %46 = vector.load %arg5[%c152, %c0_28] : memref<200x256xf32, #tpu.memory_space<vmem>>, vector<3x256xf32>
    tpu.vector_store %arg5[%c152, %c0_28], %45 {strides = array<i32>} : memref<200x256xf32, #tpu.memory_space<vmem>>, vector<3x256xf32>,
    %47 = vector.extract_strided_slice %6 {offsets = [0, 64], sizes = [3, 256], strides = [1, 1]} : vector<3x512xf32> to vector<3x256xf32>
    %c160 = arith.constant 160 : index
    %c0_29 = arith.constant 0 : index
    %48 = vector.load %arg5[%c160, %c0_29] : memref<200x256xf32, #tpu.memory_space<vmem>>, vector<3x256xf32>
    tpu.vector_store %arg5[%c160, %c0_29], %47 {strides = array<i32>} : memref<200x256xf32, #tpu.memory_space<vmem>>, vector<3x256xf32>,
    %49 = vector.extract_strided_slice %6 {offsets = [0, 65], sizes = [3, 256], strides = [1, 1]} : vector<3x512xf32> to vector<3x256xf32>
    %c168 = arith.constant 168 : index
    %c0_30 = arith.constant 0 : index
    %50 = vector.load %arg5[%c168, %c0_30] : memref<200x256xf32, #tpu.memory_space<vmem>>, vector<3x256xf32>
    tpu.vector_store %arg5[%c168, %c0_30], %49 {strides = array<i32>} : memref<200x256xf32, #tpu.memory_space<vmem>>, vector<3x256xf32>,
    %51 = vector.extract_strided_slice %6 {offsets = [0, 66], sizes = [3, 256], strides = [1, 1]} : vector<3x512xf32> to vector<3x256xf32>
    %c176 = arith.constant 176 : index
    %c0_31 = arith.constant 0 : index
    %52 = vector.load %arg5[%c176, %c0_31] : memref<200x256xf32, #tpu.memory_space<vmem>>, vector<3x256xf32>
    tpu.vector_store %arg5[%c176, %c0_31], %51 {strides = array<i32>} : memref<200x256xf32, #tpu.memory_space<vmem>>, vector<3x256xf32>,
    %53 = vector.extract_strided_slice %6 {offsets = [0, 67], sizes = [3, 256], strides = [1, 1]} : vector<3x512xf32> to vector<3x256xf32>
    %c184 = arith.constant 184 : index
    %c0_32 = arith.constant 0 : index
    %54 = vector.load %arg5[%c184, %c0_32] : memref<200x256xf32, #tpu.memory_space<vmem>>, vector<3x256xf32>
    tpu.vector_store %arg5[%c184, %c0_32], %53 {strides = array<i32>} : memref<200x256xf32, #tpu.memory_space<vmem>>, vector<3x256xf32>,
    %55 = vector.extract_strided_slice %6 {offsets = [0, 68], sizes = [3, 256], strides = [1, 1]} : vector<3x512xf32> to vector<3x256xf32>
    %c192 = arith.constant 192 : index
    %c0_33 = arith.constant 0 : index
    %56 = vector.load %arg5[%c192, %c0_33] : memref<200x256xf32, #tpu.memory_space<vmem>>, vector<3x256xf32>
    tpu.vector_store %arg5[%c192, %c0_33], %55 {strides = array<i32>} : memref<200x256xf32, #tpu.memory_space<vmem>>, vector<3x256xf32>,
    %c0_34 = arith.constant 0 : index
    %c0_35 = arith.constant 0 : index
    %57 = vector.load %arg5[%c0_34, %c0_35] : memref<200x256xf32, #tpu.memory_space<vmem>>, vector<200x256xf32>
    %cst_36 = arith.constant dense<0.000000e+00> : vector<10x256xf32>
    %58 = tpu.matmul %0, %57, %cst_36 {dimension_numbers = #tpu.dot_dimension_numbers<[1], [0], [0], [1], [0, 0, 1, 1], [], []>} : vector<10x200xf32>, vector<200x256xf32>, vector<10x256xf32> -> vector<10x256xf32>
    %59 = vector.broadcast %1 : vector<10x1xf32> to vector<10x256xf32>
    %60 = arith.addf %58, %59 : vector<10x256xf32>
    %cst_37 = arith.constant 0.000000e+00 : f32
    %61 = vector.broadcast %cst_37 : f32 to vector<10x256xf32>
    %62 = arith.maximumf %60, %61 : vector<10x256xf32>
    %c0_38 = arith.constant 0 : index
    %c0_39 = arith.constant 0 : index
    %c0_40 = arith.constant 0 : index
    %63 = vector.load %arg4[%c0_38, %c0_39, %c0_40] : memref<1x10x256xf32, #tpu.memory_space<vmem>>, vector<1x10x256xf32>
    %64 = vector.shape_cast %63 : vector<1x10x256xf32> to vector<10x256xf32>
    %65 = vector.shape_cast %62 : vector<10x256xf32> to vector<1x10x256xf32>
    tpu.vector_store %arg4[%c0_38, %c0_39, %c0_40], %65 {strides = array<i32>} : memref<1x10x256xf32, #tpu.memory_space<vmem>>, vector<1x10x256xf32>,
    return
  }
  func.func @transform_0(%arg0: i32) -> (i32, i32, i32) {
    %c0_i32 = arith.constant 0 : i32
    %c0_i32_0 = arith.constant 0 : i32
    %c0_i32_1 = arith.constant 0 : i32
    return %arg0, %c0_i32, %c0_i32_0 : i32, i32, i32
  }
  func.func @transform_1(%arg0: i32) -> (i32, i32) {
    %c0_i32 = arith.constant 0 : i32
    %c0_i32_0 = arith.constant 0 : i32
    %c0_i32_1 = arith.constant 0 : i32
    return %c0_i32, %c0_i32_0 : i32, i32
  }
  func.func @transform_2(%arg0: i32) -> (i32, i32) {
    %c0_i32 = arith.constant 0 : i32
    %c0_i32_0 = arith.constant 0 : i32
    %c0_i32_1 = arith.constant 0 : i32
    return %c0_i32, %c0_i32_0 : i32, i32
  }
  func.func @transform_3(%arg0: i32) -> (i32, i32, i32) {
    %c0_i32 = arith.constant 0 : i32
    %c0_i32_0 = arith.constant 0 : i32
    %c0_i32_1 = arith.constant 0 : i32
    return %arg0, %c0_i32, %c0_i32_0 : i32, i32, i32
  }
}

</mosaic_0001>

<bundles_post_ra>
// kernel: tpu_custom_call.1
= control target key start
LH: loop header
LB: loop body
LE: loop exit
PB: predicated region body
PF: predicated region fallthrough
CT: control target
= control target key end

     0   :  { %s879_s12 = smov 0   ;;  %s1162_s0 = inlined_call_operand.vmem [shape: f32[2,3,256], index: 0, kind: input, shape index: {}]   ;;  %s1163_s1 = inlined_call_operand.vmem [shape: f32[10,200], index: 1, kind: input, shape index: {}]   ;;  %s1164_s2 = inlined_call_operand.vmem [shape: f32[10,1], index: 2, kind: input, shape index: {}]   ;;  %s1165_s3 = inlined_call_operand.vmem [shape: f32[2,10,256], index: 3, kind: output, shape index: {}]  }
   0x1 LB: > { %s772_s13 = sadd.s32 4294967295, %s831_s12   ;;  %p776_p0 = scmp.ge.s32.totalorder %s831_s12, 1  ;;  %s831_s12 = sphi %s879_s12, %s13_s12  }
   0x2   : > { %p137_p1 = scmp.lt.s32.totalorder %s831_s12, 3 }
   0x4   : > { %p138_p2 = pnand %p776_p0, %p137_p1 }
   0x5   : > { %p161_p3 = scmp.lt.s32.totalorder (!%p138_p2), %s772_s13, 1  ;;  %s833_s18 = smov (!%p138_p2), 93  }
   0x6   : > { %141 = sbr.rel (%p138_p2) target bundleno = 477 (0x1dd), region = 32  ;;  %s834_s19 = smov (!%p138_p2), 92  }
   0x7   : > { %s835_s20 = smov (!%p138_p2), 80   ;;  %s836_s21 = smov (!%p138_p2), 94  }
   0x8   : > { %s837_s22 = smov (!%p138_p2), 95   ;;  %s838_s23 = smov (!%p138_p2), 96  }
   0x9   : > { %s839_s24 = smov (!%p138_p2), 108   ;;  %s840_s25 = smov (!%p138_p2), 109  }
   0xa   : > { %s841_s26 = smov (!%p138_p2), 110   ;;  %s842_s27 = smov (!%p138_p2), 111  }
   0xb   : > { %s1167_s13 = smov (!%p161_p3, %s772_s13), 1  ;;  %s843_s28 = smov 60   ;;  %v845_v4 = vmov 0.0   ;;  %vm400_vm0 = vcmask 760832   ;;  %vm426_vm1 = vcmask 654336   ;;  %vm413_vm2 = vcmask 752640  }
   0xc   : > { %s787_s14 = sshll.u32 %s1167_s13, 3  ;;  %s844_s29 = smov 61   ;;  %204 = vst [vmem:[#allocation2 + $0x88] sm:$0xff] %v845_v4  ;;  %vm387_vm3 = vcmask 769024   ;;  %vm374_vm4 = vcmask 777216   ;;  %vm361_vm5 = vcmask 785408  }
   0xd   : > { %s165_s17 = scalar_lea.vmem %s1162_s0, %s787_s14  ;;  %177 = vst [vmem:[#allocation2 + $0xb0] sm:$0xff] %v845_v4  ;;  %s846_s30 = smov 112   ;;  %vm348_vm6 = vcmask 883712   ;;  %vm335_vm7 = vcmask 891904   ;;  %vm322_vm8 = vcmask 900096   ;;  %vm543_vm9 = vcmask 490496  }
   0xe   : > { %v227_v0 = vld [vmem:[%s165_s17] sm:$0x77]  ;;  %178 = vst [vmem:[#allocation2 + $0xd0] sm:$0xff] %v845_v4  ;;  %s847_s4 = smov 62   ;;  %s848_s5 = smov 124   ;;  %vm309_vm10 = vcmask 908288  }
   0xf   : > { %229 = vst [vmem:[#allocation1] ss:$2 sm:$0xff] %v227_v0  ;;  %s849_s6 = smov 63   ;;  %s850_s7 = smov 125   ;;  %vm296_vm11 = vcmask 916480   ;;  %vm530_vm12 = vcmask 498688  }
  0x10   : > { %179 = vst [vmem:[#allocation2 + $0x10] sm:$0xff] %v845_v4  ;;  %s851_s8 = smov 64   ;;  %s852_s9 = smov 126   ;;  %vm517_vm13 = vcmask 506880   ;;  %vm283_vm14 = vcmask 1014784   ;;  %vm504_vm15 = vcmask 515072  }
  0x11   : > { %180 = vst [vmem:[#allocation2 + $0x48] sm:$0xff] %v845_v4  ;;  %s853_s10 = smov 76   ;;  %s854_s11 = smov 127  }
  0x12   : > { %181 = vst [vmem:[#allocation2 + $0x160] sm:$0xff] %v845_v4  ;;  %s855_s14 = smov 77   ;;  %s856_s15 = smov 78  }
  0x13   : > { %182 = vst [vmem:[#allocation2 + $0x128] sm:$0xff] %v845_v4  ;;  %s857_s16 = smov 79  }
  0x14   : > { %183 = vst [vmem:[#allocation2 + $0x40] sm:$0xff] %v845_v4 }
  0x15   : > { %184 = vst [vmem:[#allocation2 + $0x178] sm:$0xff] %v845_v4 }
  0x16   : > { %v893_v1 = vld.sshfl [vmem:[#allocation1 + $0x8] sm:$0xff pattern:$0x75316420]  ;;  %v895_v2 = vld.sshfl [vmem:[#allocation1] sm:$0xff pattern:$0x75316420] }
  0x17   : > { %396 = vrot.lane.b32.xlu2 %v893_v1, %s833_s18  ;;  %409 = vrot.lane.b32.xlu1 %v893_v1, %s834_s19  ;;  %234 = vst [vmem:[#allocation1] ss:$2 sm:$0xff] %v227_v0 }
  0x18   : > { %422 = vrot.lane.b32.xlu0 %v893_v1, %s835_s20  ;;  %185 = vst [vmem:[#allocation2 + $0x108] sm:$0xff] %v845_v4 }
  0x19   : > { %186 = vst [vmem:[#allocation2 + $0x110] sm:$0xff] %v845_v4 }
  0x1a   : > { %187 = vst [vmem:[#allocation2 + $0x90] sm:$0xff] %v845_v4 }
  0x1b   : > { %188 = vst [vmem:[#allocation2 + $0x118] sm:$0xff] %v845_v4 }
  0x1c   : > { %189 = vst [vmem:[#allocation2 + $0x148] sm:$0xff] %v845_v4 }
  0x1d   : > { %190 = vst [vmem:[#allocation2 + $0x100] sm:$0xff] %v845_v4 }
  0x1e   : > { %v900_v3 = vld.sshfl [vmem:[#allocation1] sm:$0xff pattern:$0x75316420]  ;;  %191 = vst [vmem:[#allocation2 + $0x58] sm:$0xff] %v845_v4 }
  0x1f   : > { %420 = vrot.lane.b32.xlu2 %v895_v2, %s835_s20  ;;  %411 = vrot.lane.b32.xlu1 %v900_v3, %s834_s19  ;;  %192 = vst [vmem:[#allocation2 + $0xd8] sm:$0xff] %v845_v4 }
  0x20   : > { %383 = vrot.lane.b32.xlu0 %v893_v1, %s836_s21  ;;  %193 = vst [vmem:[#allocation2 + $0x180] sm:$0xff] %v845_v4 }
  0x21   : > { %194 = vst [vmem:[#allocation2 + $0x130] sm:$0xff] %v845_v4 }
  0x22   : > { %195 = vst [vmem:[#allocation2 + $0x138] sm:$0xff] %v845_v4 }
  0x23   : > { %196 = vst [vmem:[#allocation2 + $0x120] sm:$0xff] %v845_v4 }
  0x24   : > { %197 = vst [vmem:[#allocation2 + $0xe0] sm:$0xff] %v845_v4 }
  0x25   : > { %198 = vst [vmem:[#allocation2 + $0xa8] sm:$0xff] %v845_v4 }
  0x26   : > { %199 = vst [vmem:[#allocation2 + $0xb8] sm:$0xff] %v845_v4 }
  0x27   : > { %398 = vrot.lane.b32.xlu2 %v900_v3, %s833_s18  ;;  %385 = vrot.lane.b32.xlu1 %v900_v3, %s836_s21  ;;  %200 = vst [vmem:[#allocation2 + $0x168] sm:$0xff] %v845_v4 }
  0x28   : > { %424 = vrot.lane.b32.xlu0 %v900_v3, %s835_s20  ;;  %201 = vst [vmem:[#allocation2 + $0xe8] sm:$0xff] %v845_v4 }
  0x29   : > { %202 = vst [vmem:[#allocation2 + $0xf8] sm:$0xff] %v845_v4 }
  0x2a   : > { %203 = vst [vmem:[#allocation2 + $0x20] sm:$0xff] %v845_v4 }
  0x2b   : > { %205 = vst [vmem:[#allocation2 + $0xa0] sm:$0xff] %v845_v4 }
  0x2c   : > { %206 = vst [vmem:[#allocation2 + $0x170] sm:$0xff] %v845_v4 }
  0x2d   : > { %207 = vst [vmem:[#allocation2 + $0xf0] sm:$0xff] %v845_v4 }
  0x2e   : > { %208 = vst [vmem:[#allocation2 + $0x140] sm:$0xff] %v845_v4 }
  0x2f   : > { %407 = vrot.lane.b32.xlu2 %v895_v2, %s834_s19  ;;  %372 = vrot.lane.b32.xlu1 %v900_v3, %s837_s22  ;;  %209 = vst [vmem:[#allocation2 + $0x50] sm:$0xff] %v845_v4 }
  0x30   : > { %370 = vrot.lane.b32.xlu0 %v893_v1, %s837_s22  ;;  %210 = vst [vmem:[#allocation2] sm:$0xff] %v845_v4 }
  0x31   : > { %211 = vst [vmem:[#allocation2 + $0x8] sm:$0xff] %v845_v4 }
  0x32   : > { %212 = vst [vmem:[#allocation2 + $0xc0] sm:$0xff] %v845_v4 }
  0x33   : > { %213 = vst [vmem:[#allocation2 + $0x98] sm:$0xff] %v845_v4 }
  0x34   : > { %214 = vst [vmem:[#allocation2 + $0x30] sm:$0xff] %v845_v4 }
  0x35   : > { %215 = vst [vmem:[#allocation2 + $0x188] sm:$0xff] %v845_v4 }
  0x36   : > { %216 = vst [vmem:[#allocation2 + $0x18] sm:$0xff] %v845_v4 }
  0x37   : > { %394 = vrot.lane.b32.xlu2 %v895_v2, %s833_s18  ;;  %359 = vrot.lane.b32.xlu1 %v900_v3, %s838_s23  ;;  %217 = vst [vmem:[#allocation2 + $0x28] sm:$0xff] %v845_v4 }
  0x38   : > { %357 = vrot.lane.b32.xlu0 %v893_v1, %s838_s23  ;;  %218 = vst [vmem:[#allocation2 + $0x158] sm:$0xff] %v845_v4 }
  0x39   : > { %219 = vst [vmem:[#allocation2 + $0x38] sm:$0xff] %v845_v4 }
  0x3a   : > { %220 = vst [vmem:[#allocation2 + $0x70] sm:$0xff] %v845_v4 }
  0x3b   : > { %221 = vst [vmem:[#allocation2 + $0x68] sm:$0xff] %v845_v4 }
  0x3c   : > { %222 = vst [vmem:[#allocation2 + $0x80] sm:$0xff] %v845_v4 }
  0x3d   : > { %223 = vst [vmem:[#allocation2 + $0xc8] sm:$0xff] %v845_v4 }
  0x3e   : > { %224 = vst [vmem:[#allocation2 + $0x60] sm:$0xff] %v845_v4 }
  0x3f   : > { %381 = vrot.lane.b32.xlu2 %v895_v2, %s836_s21  ;;  %346 = vrot.lane.b32.xlu1 %v900_v3, %s839_s24  ;;  %225 = vst [vmem:[#allocation2 + $0x78] sm:$0xff] %v845_v4 }
  0x40   : > { %344 = vrot.lane.b32.xlu0 %v893_v1, %s839_s24  ;;  %226 = vst [vmem:[#allocation2 + $0x150] sm:$0xff] %v845_v4 }
  0x41   : > { %236 = vst [vmem:[#allocation2 + $0xb0] sm:$0x7] %v895_v2 }
  0x42   : > { %237 = vst [vmem:[#allocation2 + $0xd0] sm:$0x7] %v893_v1 }
  0x47   : > { %368 = vrot.lane.b32.xlu2 %v895_v2, %s837_s22  ;;  %333 = vrot.lane.b32.xlu1 %v900_v3, %s840_s25 }
  0x48   : > { %331 = vrot.lane.b32.xlu0 %v893_v1, %s840_s25 }
  0x4f   : > { %355 = vrot.lane.b32.xlu2 %v895_v2, %s838_s23  ;;  %320 = vrot.lane.b32.xlu1 %v900_v3, %s841_s26 }
  0x50   : > { %318 = vrot.lane.b32.xlu0 %v893_v1, %s841_s26 }
  0x57   : > { %305 = vrot.lane.b32.xlu2 %v893_v1, %s842_s27  ;;  %541 = vrot.lane.b32.xlu1 %v900_v3, %s843_s28 }
  0x58   : > { %539 = vrot.lane.b32.xlu0 %v893_v1, %s843_s28 }
  0x5f   : > { %526 = vrot.lane.b32.xlu2 %v893_v1, %s844_s29  ;;  %342 = vrot.lane.b32.xlu1 %v895_v2, %s839_s24 }
  0x60   : > { %307 = vrot.lane.b32.xlu0 %v900_v3, %s842_s27 }
  0x67   : > { %294 = vrot.lane.b32.xlu2 %v900_v3, %s846_s30  ;;  %292 = vrot.lane.b32.xlu1 %v893_v1, %s846_s30 }
  0x68   : > { %528 = vrot.lane.b32.xlu0 %v900_v3, %s844_s29 }
  0x6f   : > { %515 = vrot.lane.b32.xlu2 %v900_v3, %s847_s4  ;;  %513 = vrot.lane.b32.xlu1 %v893_v1, %s847_s4 }
  0x70   : > { %329 = vrot.lane.b32.xlu0 %v895_v2, %s840_s25 }
  0x71   : > { %v966_v5 = vpop.permute.xlu2 %396 }
  0x77   : > { %316 = vrot.lane.b32.xlu2 %v895_v2, %s841_s26  ;;  %281 = vrot.lane.b32.xlu1 %v900_v3, %s848_s5 }
  0x78   : > { %279 = vrot.lane.b32.xlu0 %v893_v1, %s848_s5 }
  0x79   : > { %v421_v6 = vpop.permute.xlu2 %420 }
  0x7f   : > { %537 = vrot.lane.b32.xlu2 %v895_v2, %s843_s28  ;;  %502 = vrot.lane.b32.xlu1 %v900_v3, %s849_s6 }
  0x80   : > { %500 = vrot.lane.b32.xlu0 %v893_v1, %s849_s6 }
  0x81   : > { %v399_v7 = vpop.permute.xlu2 %398 }
  0x82   : > { %v402_v8 = vsel %vm400_vm0, %v966_v5, %v399_v7 }
  0x83   : > { %406 = vst [vmem:[#allocation2 + $0x88] sm:$0x7] %v402_v8 }
  0x87   : > { %303 = vrot.lane.b32.xlu2 %v895_v2, %s842_s27  ;;  %268 = vrot.lane.b32.xlu1 %v900_v3, %s850_s7 }
  0x88   : > { %266 = vrot.lane.b32.xlu0 %v893_v1, %s850_s7 }
  0x89   : > { %v410_v9 = vpop.permute.xlu1 %409  ;;  %v408_v10 = vpop.permute.xlu2 %407 }
  0x8a   : > { %v423_v11 = vpop.permute.xlu0 %422  ;;  %v414_v16 = vsel %vm413_vm2, %v408_v10, %v410_v9  ;;  %v577_v36 = vld [vmem:[#allocation2 + $0x88] sm:$0xff] }
  0x8b   : > { %v427_v15 = vsel %vm426_vm1, %v421_v6, %v423_v11  ;;  %418 = vst [vmem:[#allocation2 + $0xa0] sm:$0x7] %v414_v16 }
  0x8c   : > { %431 = vst [vmem:[#allocation2 + $0xf0] sm:$0x7] %v427_v15 }
  0x8f   : > { %524 = vrot.lane.b32.xlu2 %v895_v2, %s844_s29  ;;  %489 = vrot.lane.b32.xlu1 %v900_v3, %s851_s8  ;;  %s788_s29 = sshll.u32 %s1167_s13, 5 }
  0x90   : > { %487 = vrot.lane.b32.xlu0 %v893_v1, %s851_s8 }
  0x91   : > { %v395_v12 = vpop.permute.xlu2 %394  ;;  %v412_v13 = vpop.permute.xlu1 %411 }
  0x92   : > { %v384_v14 = vpop.permute.xlu0 %383  ;;  %v401_v17 = vsel %vm400_vm0, %v395_v12, %v966_v5  ;;  %v415_v18 = vsel %vm413_vm2, %v410_v9, %v412_v13  ;;  %v578_v26 = vld [vmem:[#allocation2 + $0xa0] sm:$0xff]  ;;  %vm270_vm0 = vcmask 1022976   ;;  %vm257_vm2 = vcmask 1031168  }
  0x93   : > { %405 = vst [vmem:[#allocation2 + $0x20] sm:$0x7] %v401_v17  ;;  %v580_v25 = vld [vmem:[#allocation2 + $0xf0] sm:$0xff] }
  0x94   : > { %419 = vst [vmem:[#allocation2 + $0x170] sm:$0x7] %v415_v18  ;;  %617 = vmatpush.msra.mxu0 %v580_v25 }
  0x96   : > { %618 = vmatpush.msra.mxu0 %v578_v26 }
  0x97   : > { %290 = vrot.lane.b32.xlu2 %v895_v2, %s846_s30  ;;  %255 = vrot.lane.b32.xlu1 %v900_v3, %s852_s9 }
  0x98   : > { %253 = vrot.lane.b32.xlu0 %v893_v1, %s852_s9 }
  0x99   : > { %v382_v19 = vpop.permute.xlu2 %381  ;;  %v386_v20 = vpop.permute.xlu1 %385 }
  0x9a   : > { %v388_v21 = vsel %vm387_vm3, %v382_v19, %v384_v14  ;;  %v389_v22 = vsel %vm387_vm3, %v384_v14, %v386_v20  ;;  %v425_v23 = vpop.permute.xlu0 %424  ;;  %v576_v27 = vld [vmem:[#allocation2 + $0x20] sm:$0xff]  ;;  %vm478_vm3 = vcmask 621568  }
  0x9b   : > { %392 = vst [vmem:[#allocation2 + $0xe8] sm:$0x7] %v388_v21  ;;  %v428_v24 = vsel %vm426_vm1, %v423_v11, %v425_v23  ;;  %619 = vmatpush.msra.mxu0 %v576_v27  ;;  %v579_v35 = vld [vmem:[#allocation2 + $0x170] sm:$0xff]  ;;  %vm491_vm1 = vcmask 523264  }
  0x9c   : > { %393 = vst [vmem:[#allocation2 + $0xf8] sm:$0x7] %v389_v22 }
  0x9d   : > { %432 = vst [vmem:[#allocation2 + $0x140] sm:$0x7] %v428_v24 }
  0x9f   : > { %511 = vrot.lane.b32.xlu2 %v895_v2, %s847_s4  ;;  %476 = vrot.lane.b32.xlu1 %v900_v3, %s853_s10 }
  0xa0   : > { %474 = vrot.lane.b32.xlu0 %v893_v1, %s853_s10 }
  0xa1   : > { %v369_v28 = vpop.permute.xlu2 %368  ;;  %v373_v29 = vpop.permute.xlu1 %372 }
  0xa2   : > { %v371_v30 = vpop.permute.xlu0 %370  ;;  %v574_v31 = vld [vmem:[#allocation2 + $0xe8] sm:$0xff] }
  0xa3   : > { %v375_v32 = vsel %vm374_vm4, %v369_v28, %v371_v30  ;;  %v376_v33 = vsel %vm374_vm4, %v371_v30, %v373_v29  ;;  %620 = vmatpush.msra.mxu0 %v574_v31  ;;  %v575_v39 = vld [vmem:[#allocation2 + $0xf8] sm:$0xff]  ;;  %vm244_vm4 = vcmask 1039360  }
  0xa4   : > { %379 = vst [vmem:[#allocation2 + $0xb8] sm:$0x7] %v375_v32  ;;  %v581_v34 = vld [vmem:[#allocation2 + $0x140] sm:$0xff] }
  0xa5   : > { %380 = vst [vmem:[#allocation2 + $0x168] sm:$0x7] %v376_v33  ;;  %663 = vmatpush.msra.mxu2 %v581_v34 }
  0xa7   : > { %664 = vmatpush.msra.mxu2 %v579_v35  ;;  %277 = vrot.lane.b32.xlu2 %v895_v2, %s848_s5  ;;  %s170_s5 = scalar_lea.vmem %s1165_s3, %s788_s29 }
  0xa8   : > { %242 = vrot.lane.b32.xlu1 %v900_v3, %s854_s11  ;;  %240 = vrot.lane.b32.xlu0 %v893_v1, %s854_s11 }
  0xa9   : > { %665 = vmatpush.msra.mxu2 %v577_v36  ;;  %v356_v37 = vpop.permute.xlu2 %355  ;;  %v360_v38 = vpop.permute.xlu1 %359 }
  0xaa   : > { %v358_v40 = vpop.permute.xlu0 %357 }
  0xab   : > { %666 = vmatpush.msra.mxu2 %v575_v39  ;;  %v362_v41 = vsel %vm361_vm5, %v356_v37, %v358_v40  ;;  %v363_v42 = vsel %vm361_vm5, %v358_v40, %v360_v38  ;;  %v572_v43 = vld [vmem:[#allocation2 + $0xb8] sm:$0xff]  ;;  %vm465_vm5 = vcmask 629760  }
  0xac   : > { %366 = vst [vmem:[#allocation2 + $0xe0] sm:$0x7] %v362_v41  ;;  %621 = vmatpush.msra.mxu0 %v572_v43  ;;  %v573_v44 = vld [vmem:[#allocation2 + $0x168] sm:$0xff] }
  0xad   : > { %367 = vst [vmem:[#allocation2 + $0xa8] sm:$0x7] %v363_v42  ;;  %667 = vmatpush.msra.mxu2 %v573_v44 }
  0xaf   : > { %498 = vrot.lane.b32.xlu2 %v895_v2, %s849_s6 }
  0xb0   : > { %463 = vrot.lane.b32.xlu1 %v900_v3, %s855_s14  ;;  %461 = vrot.lane.b32.xlu0 %v893_v1, %s855_s14 }
  0xb1   : > { %v1058_v45 = vpop.permute.xlu2 %305  ;;  %v347_v46 = vpop.permute.xlu1 %346 }
  0xb2   : > { %v345_v47 = vpop.permute.xlu0 %344 }
  0xb3   : > { %v350_v48 = vsel %vm348_vm6, %v345_v47, %v347_v46  ;;  %v570_v49 = vld [vmem:[#allocation2 + $0xe0] sm:$0xff] }
  0xb4   : > { %354 = vst [vmem:[#allocation2 + $0x120] sm:$0x7] %v350_v48  ;;  %622 = vmatpush.msra.mxu0 %v570_v49  ;;  %v571_v50 = vld [vmem:[#allocation2 + $0xa8] sm:$0xff] }
  0xb5   : > { %668 = vmatpush.msra.mxu2 %v571_v50 }
  0xb7   : > { %450 = vrot.lane.b32.xlu2 %v900_v3, %s856_s15 }
  0xb8   : > { %448 = vrot.lane.b32.xlu1 %v893_v1, %s856_s15  ;;  %264 = vrot.lane.b32.xlu0 %v895_v2, %s850_s7 }
  0xb9   : > { %v1067_v51 = vpop.permute.xlu2 %526  ;;  %v334_v52 = vpop.permute.xlu1 %333 }
  0xba   : > { %v1069_v53 = vpop.permute.xlu0 %331 }
  0xbb   : > { %v337_v54 = vsel %vm335_vm7, %v1069_v53, %v334_v52  ;;  %v569_v55 = vld [vmem:[#allocation2 + $0x120] sm:$0xff] }
  0xbc   : > { %341 = vst [vmem:[#allocation2 + $0x130] sm:$0x7] %v337_v54  ;;  %669 = vmatpush.msra.mxu2 %v569_v55 }
  0xbf   : > { %435 = vrot.lane.b32.xlu2 %v893_v1, %s857_s16 }
  0xc0   : > { %251 = vrot.lane.b32.xlu1 %v895_v2, %s852_s9  ;;  %485 = vrot.lane.b32.xlu0 %v895_v2, %s851_s8 }
  0xc1   : > { %v295_v56 = vpop.permute.xlu2 %294  ;;  %v321_v57 = vpop.permute.xlu1 %320 }
  0xc2   : > { %v319_v58 = vpop.permute.xlu0 %318 }
  0xc3   : > { %v324_v59 = vsel %vm322_vm8, %v319_v58, %v321_v57  ;;  %v567_v60 = vld [vmem:[#allocation2 + $0x130] sm:$0xff] }
  0xc4   : > { %328 = vst [vmem:[#allocation2 + $0xd8] sm:$0x7] %v324_v59  ;;  %670 = vmatpush.msra.mxu2 %v567_v60 }
  0xc7   : > { %238 = vrot.lane.b32.xlu2 %v895_v2, %s854_s11 }
  0xc8   : > { %472 = vrot.lane.b32.xlu1 %v895_v2, %s853_s10  ;;  %437 = vrot.lane.b32.xlu0 %v900_v3, %s857_s16 }
  0xc9   : > { %v516_v61 = vpop.permute.xlu2 %515  ;;  %v542_v62 = vpop.permute.xlu1 %541 }
  0xca   : > { %v540_v63 = vpop.permute.xlu0 %539 }
  0xcb   : > { %v545_v0 = vsel %vm543_vm9, %v540_v63, %v542_v62  ;;  %v565_v1 = vld [vmem:[#allocation2 + $0xd8] sm:$0xff] }
  0xcc   : > { %549 = vst [vmem:[#allocation2 + $0x150] sm:$0x7] %v545_v0  ;;  %671 = vmatpush.msra.mxu2 %v565_v1 }
  0xcf   : > { %433 = vrot.lane.b32.xlu2 %v895_v2, %s857_s16 }
  0xd0   : > { %446 = vrot.lane.b32.xlu1 %v895_v2, %s856_s15  ;;  %459 = vrot.lane.b32.xlu0 %v895_v2, %s855_s14 }
  0xd1   : > { %v317_v4 = vpop.permute.xlu2 %316  ;;  %v343_v3 = vpop.permute.xlu1 %342 }
  0xd2   : > { %v323_v5 = vsel %vm322_vm8, %v317_v4, %v319_v58  ;;  %v349_v6 = vsel %vm348_vm6, %v343_v3, %v345_v47  ;;  %v308_v7 = vpop.permute.xlu0 %307  ;;  %vm439_vm6 = vcmask 646144   ;;  %vm610_vm8 = vcmask 588800  }
  0xd3   : > { %327 = vst [vmem:[#allocation2 + $0x58] sm:$0x7] %v323_v5  ;;  %v311_v8 = vsel %vm309_vm10, %v1058_v45, %v308_v7  ;;  %v599_v9 = vld [vmem:[#allocation2 + $0x150] sm:$0xff] }
  0xd4   : > { %353 = vst [vmem:[#allocation2 + $0x138] sm:$0x7] %v349_v6  ;;  %693 = vmatpush.msra.mxu3 %v599_v9 }
  0xd5   : > { %315 = vst [vmem:[#allocation2 + $0x100] sm:$0x7] %v311_v8 }
  0xd9   : > { %v538_v10 = vpop.permute.xlu2 %537  ;;  %v293_v2 = vpop.permute.xlu1 %292 }
  0xda   : > { %v544_v11 = vsel %vm543_vm9, %v538_v10, %v540_v63  ;;  %v298_v12 = vsel %vm296_vm11, %v293_v2, %v295_v56  ;;  %v529_v13 = vpop.permute.xlu0 %528  ;;  %v564_v33 = vld [vmem:[#allocation2 + $0x58] sm:$0xff] }
  0xdb   : > { %548 = vst [vmem:[#allocation2 + $0x78] sm:$0x7] %v544_v11  ;;  %v532_v14 = vsel %vm530_vm12, %v1067_v51, %v529_v13  ;;  %v568_v15 = vld [vmem:[#allocation2 + $0x138] sm:$0xff] }
  0xdc   : > { %302 = vst [vmem:[#allocation2 + $0x118] sm:$0x7] %v298_v12  ;;  %623 = vmatpush.msra.mxu0 %v568_v15  ;;  %v563_v16 = vld [vmem:[#allocation2 + $0x100] sm:$0xff] }
  0xdd   : > { %536 = vst [vmem:[#allocation2 + $0x60] sm:$0x7] %v532_v14  ;;  %672 = vmatpush.msra.mxu2 %v563_v16  ;;  %v551_v16 = vld [vmem:[#allocation2 + $0xd0] sm:$0xff] }
  0xe1   : > { %v304_v17 = vpop.permute.xlu2 %303  ;;  %v514_v18 = vpop.permute.xlu1 %513 }
  0xe2   : > { %v310_v19 = vsel %vm309_vm10, %v304_v17, %v1058_v45  ;;  %v519_v20 = vsel %vm517_vm13, %v514_v18, %v516_v61  ;;  %v330_v21 = vpop.permute.xlu0 %329  ;;  %v598_v22 = vld [vmem:[#allocation2 + $0x78] sm:$0xff] }
  0xe3   : > { %314 = vst [vmem:[#allocation2 + $0x148] sm:$0x7] %v310_v19  ;;  %v336_v23 = vsel %vm335_vm7, %v330_v21, %v1069_v53  ;;  %647 = vmatpush.msra.mxu1 %v598_v22  ;;  %v561_v24 = vld [vmem:[#allocation2 + $0x118] sm:$0xff]  ;;  %vm452_vm7 = vcmask 637952  }
  0xe4   : > { %523 = vst [vmem:[#allocation2 + $0x80] sm:$0x7] %v519_v20  ;;  %v597_v25 = vld [vmem:[#allocation2 + $0x60] sm:$0xff]  ;;  %673 = vmatpush.msra.mxu2 %v561_v24  ;;  %v171_v17 = vld [vmem:[%s1163_s1] sm:$0xff] }
  0xe5   : > { %340 = vst [vmem:[#allocation2 + $0x180] sm:$0x7] %v336_v23  ;;  %694 = vmatpush.msra.mxu3 %v597_v25 }
  0xe9   : > { %v525_v26 = vpop.permute.xlu2 %524  ;;  %v282_v27 = vpop.permute.xlu1 %281 }
  0xea   : > { %v531_v28 = vsel %vm530_vm12, %v525_v26, %v1067_v51  ;;  %v280_v29 = vpop.permute.xlu0 %279  ;;  %v562_v34 = vld [vmem:[#allocation2 + $0x148] sm:$0xff] }
  0xeb   : > { %535 = vst [vmem:[#allocation2 + $0xc8] sm:$0x7] %v531_v28  ;;  %v285_v30 = vsel %vm283_vm14, %v280_v29, %v282_v27  ;;  %v595_v31 = vld [vmem:[#allocation2 + $0x80] sm:$0xff]  ;;  %v173_v27 = vld [vmem:[%s1163_s1 + $0x10] sm:$0x3] }
  0xec   : > { %289 = vst [vmem:[#allocation2 + $0x110] sm:$0x7] %v285_v30  ;;  %v566_v32 = vld [vmem:[#allocation2 + $0x180] sm:$0xff]  ;;  %695 = vmatpush.msra.mxu3 %v595_v31  ;;  %v858_v31 = vmov 0  }
  0xed   : > { %624 = vmatpush.msra.mxu0 %v566_v32  ;;  %823 = vset.pattern.permute.xlu0 %v858_v31 }
  0xee   : > { %824 = vset.pattern.permute.xlu1 %v858_v31 }
  0xef   : > { %625 = vmatpush.msra.mxu0 %v564_v33 }
  0xf1   : > { %626 = vmatpush.msra.mxu0 %v562_v34  ;;  %v291_v35 = vpop.permute.xlu2 %290  ;;  %v503_v36 = vpop.permute.xlu1 %502 }
  0xf2   : > { %v297_v37 = vsel %vm296_vm11, %v291_v35, %v293_v2  ;;  %v501_v38 = vpop.permute.xlu0 %500  ;;  %v596_v39 = vld [vmem:[#allocation2 + $0xc8] sm:$0xff]  ;;  %v175_v35 = vld [vmem:[%s1164_s2] sm:$0xff] }
  0xf3   : > { %301 = vst [vmem:[#allocation2 + $0x90] sm:$0x7] %v297_v37  ;;  %v506_v40 = vsel %vm504_vm15, %v501_v38, %v503_v36  ;;  %648 = vmatpush.msra.mxu1 %v596_v39  ;;  %v559_v41 = vld [vmem:[#allocation2 + $0x110] sm:$0xff]  ;;  %v176_v36 = vld [vmem:[%s1164_s2 + $0x8] sm:$0x3]  ;;  %602 = vperm.xlu0 %823, %v175_v35  }
  0xf4   : > { %510 = vst [vmem:[#allocation2 + $0x70] sm:$0x7] %v506_v40  ;;  %674 = vmatpush.msra.mxu2 %v559_v41  ;;  %607 = vperm.xlu1 %824, %v176_v36  }
  0xf9   : > { %v512_v42 = vpop.permute.xlu2 %511  ;;  %v269_v43 = vpop.permute.xlu1 %268 }
  0xfa   : > { %v518_v44 = vsel %vm517_vm13, %v512_v42, %v514_v18  ;;  %v1109_v45 = vpop.permute.xlu0 %266  ;;  %v560_v46 = vld [vmem:[#allocation2 + $0x90] sm:$0xff] }
  0xfb   : > { %522 = vst [vmem:[#allocation2 + $0x68] sm:$0x7] %v518_v44  ;;  %v272_v47 = vsel %vm270_vm0, %v1109_v45, %v269_v43  ;;  %627 = vmatpush.msra.mxu0 %v560_v46  ;;  %v593_v48 = vld [vmem:[#allocation2 + $0x70] sm:$0xff] }
  0xfc   : > { %276 = vst [vmem:[#allocation2 + $0x178] sm:$0x7] %v272_v47  ;;  %696 = vmatpush.msra.mxu3 %v593_v48  ;;  %v550_v42 = vld [vmem:[#allocation2 + $0xb0] sm:$0xff]  ;;  %v172_v48 = vld [vmem:[%s1163_s1 + $0x8] sm:$0xff] }
 0x101   : > { %v278_v49 = vpop.permute.xlu2 %277  ;;  %v490_v50 = vpop.permute.xlu1 %489 }
 0x102   : > { %v284_v51 = vsel %vm283_vm14, %v278_v49, %v280_v29  ;;  %v1114_v52 = vpop.permute.xlu0 %487  ;;  %v594_v53 = vld [vmem:[#allocation2 + $0x68] sm:$0xff] }
 0x103   : > { %288 = vst [vmem:[#allocation2 + $0x108] sm:$0x7] %v284_v51  ;;  %v493_v54 = vsel %vm491_vm1, %v1114_v52, %v490_v50  ;;  %649 = vmatpush.msra.mxu1 %v594_v53  ;;  %v557_v55 = vld [vmem:[#allocation2 + $0x178] sm:$0xff]  ;;  %v174_v50 = vld [vmem:[%s1163_s1 + $0x18] sm:$0x3] }
 0x104   : > { %497 = vst [vmem:[#allocation2 + $0x158] sm:$0x7] %v493_v54  ;;  %675 = vmatpush.msra.mxu2 %v557_v55 }
 0x109   : > { %v499_v56 = vpop.permute.xlu2 %498  ;;  %v256_v57 = vpop.permute.xlu1 %255 }
 0x10a   : > { %v505_v58 = vsel %vm504_vm15, %v499_v56, %v501_v38  ;;  %v254_v59 = vpop.permute.xlu0 %253  ;;  %v558_v60 = vld [vmem:[#allocation2 + $0x108] sm:$0xff] }
 0x10b   : > { %509 = vst [vmem:[#allocation2 + $0x38] sm:$0x7] %v505_v58  ;;  %v259_v61 = vsel %vm257_vm2, %v254_v59, %v256_v57  ;;  %628 = vmatpush.msra.mxu0 %v558_v60  ;;  %v591_v62 = vld [vmem:[#allocation2 + $0x158] sm:$0xff] }
 0x10c   : > { %263 = vst [vmem:[#allocation2 + $0x128] sm:$0x7] %v259_v61  ;;  %697 = vmatpush.msra.mxu3 %v591_v62 }
 0x111   : > { %v451_v63 = vpop.permute.xlu2 %450  ;;  %v477_v0 = vpop.permute.xlu1 %476 }
 0x112   : > { %v475_v1 = vpop.permute.xlu0 %474  ;;  %v592_v4 = vld [vmem:[#allocation2 + $0x38] sm:$0xff] }
 0x113   : > { %v480_v3 = vsel %vm478_vm3, %v475_v1, %v477_v0  ;;  %650 = vmatpush.msra.mxu1 %v592_v4  ;;  %v555_v5 = vld [vmem:[#allocation2 + $0x128] sm:$0xff] }
 0x114   : > { %484 = vst [vmem:[#allocation2 + $0x18] sm:$0x7] %v480_v3  ;;  %676 = vmatpush.msra.mxu2 %v555_v5 }
 0x119   : > { %v436_v6 = vpop.permute.xlu2 %435 }
 0x11a   : > { %v243_v7 = vpop.permute.xlu1 %242  ;;  %v241_v8 = vpop.permute.xlu0 %240 }
 0x11b   : > { %v246_v9 = vsel %vm244_vm4, %v241_v8, %v243_v7  ;;  %v589_v10 = vld [vmem:[#allocation2 + $0x18] sm:$0xff] }
 0x11c   : > { %250 = vst [vmem:[#allocation2 + $0x48] sm:$0x7] %v246_v9  ;;  %698 = vmatpush.msra.mxu3 %v589_v10 }
 0x121   : > { %v239_v2 = vpop.permute.xlu2 %238 }
 0x122   : > { %v245_v11 = vsel %vm244_vm4, %v239_v2, %v241_v8  ;;  %v464_v12 = vpop.permute.xlu1 %463  ;;  %v462_v13 = vpop.permute.xlu0 %461 }
 0x123   : > { %249 = vst [vmem:[#allocation2 + $0x10] sm:$0x7] %v245_v11  ;;  %v467_v14 = vsel %vm465_vm5, %v462_v13, %v464_v12  ;;  %v553_v15 = vld [vmem:[#allocation2 + $0x48] sm:$0xff] }
 0x124   : > { %471 = vst [vmem:[#allocation2 + $0x30] sm:$0x7] %v467_v14  ;;  %677 = vmatpush.msra.mxu2 %v553_v15 }
 0x126   : > { %678 = vmatpush.msra.mxu2 %v551_v16 }
 0x127   : > { %679 = vmatmul.f32.vlgmr.msra.gmra.mxu2 %v171_v17 }
 0x129   : > { %v434_v18 = vpop.permute.xlu2 %433 }
 0x12a   : > { %v449_v19 = vpop.permute.xlu1 %448  ;;  %v265_v20 = vpop.permute.xlu0 %264  ;;  %v440_v21 = vsel %vm439_vm6, %v434_v18, %v436_v6  ;;  %v552_v41 = vld [vmem:[#allocation2 + $0x10] sm:$0xff] }
 0x12b   : > { %v454_v22 = vsel %vm452_vm7, %v449_v19, %v451_v63  ;;  %v271_v23 = vsel %vm270_vm0, %v265_v20, %v1109_v45  ;;  %v587_v24 = vld [vmem:[#allocation2 + $0x30] sm:$0xff]  ;;  %444 = vst [vmem:[#allocation2 + $0x50] sm:$0x7] %v440_v21 }
 0x12c   : > { %458 = vst [vmem:[#allocation2 + $0xc0] sm:$0x7] %v454_v22  ;;  %699 = vmatpush.msra.mxu3 %v587_v24 }
 0x12d   : > { %275 = vst [vmem:[#allocation2 + $0x40] sm:$0x7] %v271_v23 }
 0x12f   : > { %682 = vmatmul.f32.gmra.mxu2 %v173_v27 }
 0x132   : > { %v252_v25 = vpop.permute.xlu1 %251  ;;  %v486_v26 = vpop.permute.xlu0 %485  ;;  %v582_v53 = vld [vmem:[#allocation2 + $0x50] sm:$0xff] }
 0x133   : > { %v258_v28 = vsel %vm257_vm2, %v252_v25, %v254_v59  ;;  %v492_v29 = vsel %vm491_vm1, %v486_v26, %v1114_v52  ;;  %v585_v30 = vld [vmem:[#allocation2 + $0xc0] sm:$0xff] }
 0x134   : > { %262 = vst [vmem:[#allocation2 + $0x160] sm:$0x7] %v258_v28  ;;  %v556_v32 = vld [vmem:[#allocation2 + $0x40] sm:$0xff]  ;;  %700 = vmatpush.msra.mxu3 %v585_v30 }
 0x135   : > { %496 = vst [vmem:[#allocation2 + $0x28] sm:$0x7] %v492_v29  ;;  %629 = vmatpush.msra.mxu0 %v556_v32 }
 0x13a   : > { %v473_v33 = vpop.permute.xlu1 %472  ;;  %v438_v34 = vpop.permute.xlu0 %437 }
 0x13b   : > { %v479_v37 = vsel %vm478_vm3, %v473_v33, %v475_v1  ;;  %v441_v38 = vsel %vm439_vm6, %v436_v6, %v438_v34  ;;  %v554_v39 = vld [vmem:[#allocation2 + $0x160] sm:$0xff] }
 0x13c   : > { %483 = vst [vmem:[#allocation2 + $0x188] sm:$0x7] %v479_v37  ;;  %630 = vmatpush.msra.mxu0 %v554_v39  ;;  %v590_v40 = vld [vmem:[#allocation2 + $0x28] sm:$0xff] }
 0x13d   : > { %445 = vst [vmem:[#allocation2] sm:$0x7] %v441_v38  ;;  %651 = vmatpush.msra.mxu1 %v590_v40 }
 0x13e   : > { %631 = vmatpush.msra.mxu0 %v552_v41 }
 0x140   : > { %632 = vmatpush.msra.mxu0 %v550_v42 }
 0x141   : > { %633 = vmatmul.f32.vlgmr.msra.gmra.mxu0 %v171_v17 }
 0x142   : > { %v447_v43 = vpop.permute.xlu1 %446  ;;  %v460_v44 = vpop.permute.xlu0 %459 }
 0x143   : > { %v453_v45 = vsel %vm452_vm7, %v447_v43, %v449_v19  ;;  %v466_v46 = vsel %vm465_vm5, %v460_v44, %v462_v13  ;;  %v588_v47 = vld [vmem:[#allocation2 + $0x188] sm:$0xff] }
 0x144   : > { %457 = vst [vmem:[#allocation2 + $0x8] sm:$0x7] %v453_v45  ;;  %652 = vmatpush.msra.mxu1 %v588_v47  ;;  %v583_v49 = vld [vmem:[#allocation2] sm:$0xff] }
 0x145   : > { %470 = vst [vmem:[#allocation2 + $0x98] sm:$0x7] %v466_v46  ;;  %701 = vmatpush.msra.mxu3 %v583_v49 }
 0x146   : > { %783 = vmatmul.msk.f32.vlgmr.msra.gmra.mxu3 %vm610_vm8, %v172_v48 }
 0x149   : > { %636 = vmatmul.f32.gmra.mxu0 %v173_v27 }
 0x14b   : > { %v584_v52 = vld [vmem:[#allocation2 + $0x8] sm:$0xff] }
 0x14c   : > { %v586_v51 = vld [vmem:[#allocation2 + $0x98] sm:$0xff] }
 0x14d   : > { %653 = vmatpush.msra.mxu1 %v586_v51 }
 0x14e   : > { %784 = vmatmul.msk.f32.gmra.mxu3 %vm610_vm8, %v174_v50 }
 0x14f   : > { %654 = vmatpush.msra.mxu1 %v584_v52 }
 0x151   : > { %655 = vmatpush.msra.mxu1 %v582_v53 }
 0x152   : > { %781 = vmatmul.msk.f32.vlgmr.msra.gmra.mxu1 %vm610_vm8, %v172_v48 }
 0x15a   : > { %782 = vmatmul.msk.f32.gmra.mxu1 %vm610_vm8, %v174_v50 }
 0x165   : > { %v603_v55 = vpop.permute.xlu0 %602 }
 0x166   : > { %v608_v60 = vpop.permute.xlu1 %607 }
 0x1aa   : > { %v680_v54 = vpop.f32.mrf.mxu2 }
 0x1ab   : > { %v681_v56 = vadd.f32 %v680_v54, %v603_v55 }
 0x1b2   : > { %v683_v61 = vpop.f32.mrf.mxu2 }
 0x1b3   : > { %v684_v0 = vadd.f32 %v683_v61, %v608_v60 }
 0x1be   : > { %v634_v57 = vpop.f32.mrf.mxu0 }
 0x1bf   : > { %v635_v62 = vadd.f32 %v634_v57, %v603_v55 }
 0x1c6   : > { %v637_v3 = vpop.f32.mrf.mxu0 }
 0x1c7   : > { %v638_v8 = vadd.f32 %v637_v3, %v608_v60 }
 0x1c9   : > { %v703_v58 = vpop.f32.mrf.mxu3 }
 0x1ca   : > { %v704_v59 = vadd.f32 %v703_v58, %v681_v56 }
 0x1cc   : > { %v710_v63 = vmax.f32 %v704_v59, 0.0 }
 0x1ce   : > { %714 = vst [vmem:[%s170_s5 + $0x8] sm:$0xff] %v710_v63 }
 0x1cf   : > { %v657_v1 = vpop.f32.mrf.mxu1 }
 0x1d0   : > { %v658_v4 = vadd.f32 %v657_v1, %v635_v62 }
 0x1d1   : > { %v706_v5 = vpop.f32.mrf.mxu3 }
 0x1d2   : > { %v709_v6 = vmax.f32 %v658_v4, 0.0  ;;  %v707_v7 = vadd.f32 %v706_v5, %v684_v0 }
 0x1d4   : > { %713 = vst [vmem:[%s170_s5] sm:$0xff] %v709_v6  ;;  %v712_v9 = vmax.f32 %v707_v7, 0.0 }
 0x1d6   : > { %716 = vst [vmem:[%s170_s5 + $0x18] sm:$0x3] %v712_v9 }
 0x1d7   : > { %v660_v10 = vpop.f32.mrf.mxu1 }
 0x1d8   : > { %v661_v2 = vadd.f32 %v660_v10, %v638_v8 }
 0x1da   : > { %v711_v11 = vmax.f32 %v661_v2, 0.0 }
 0x1dc   : > { %715 = vst [vmem:[%s170_s5 + $0x10] sm:$0x3] %v711_v11 }
 0x1dd PF: > { %s13_s12 = sadd.s32 1, %s831_s12  }
 0x1de   : > { %p10_p4 = scmp.ge.s32.totalorder %s13_s12, 4  }
 0x1e0   :  { %12 = sbr.rel (!%p10_p4) target bundleno = 1 (0x1), region = 62 }

</bundles_post_ra>
